<compile_context>
chip_gen: v7x
topology: tpu7x:2x2x1
jax: 0.10.0
libtpu: 0.0.40
codegen_flags: <defaults>
</compile_context>

<pallas_src>
import math

import jax
import jax.numpy as jnp
import numpy as np
from jax.experimental import pallas as pl
from jax.experimental.pallas import tpu as pltpu


def build_pe_table(max_len: int, d_model: int) -> jnp.ndarray:
    """Host-side sinusoidal table, computed in float32 (cast to x.dtype in the wrapper)."""
    position = np.arange(max_len, dtype=np.float32)[:, None]                      # (max_len, 1)
    div_term = np.exp(
        np.arange(0, d_model, 2, dtype=np.float32) * (-math.log(10000.0) / d_model)
    )                                                                              # (ceil(d/2),)
    angles = position * div_term                                                   # (max_len, ceil(d/2))
    pe = np.zeros((max_len, d_model), dtype=np.float32)
    pe[:, 0::2] = np.sin(angles)
    pe[:, 1::2] = np.cos(angles)[:, : d_model // 2]                                # handles odd d_model
    return jnp.asarray(pe)


def _add_pe_kernel(x_ref, pe_ref, o_ref):
    # Shared body for both layouts:
    #   3D path:   x (1, TILE_SEQ, d_model) + pe (TILE_SEQ, d_model)   -> broadcast over batch.
    #   flat path: x (TILE_B, TILE_FLAT)    + pe (1, TILE_FLAT)        -> broadcast over batch rows.
    o_ref[...] = x_ref[...] + pe_ref[...]


def _pe_add_3d(x: jnp.ndarray, pe: jnp.ndarray) -> jnp.ndarray:
    """d_model is a multiple of 128: tile (1, TILE_SEQ, d_model); PE reused across batch."""
    batch, seq_len, d_model = x.shape
    dtype_bytes = jnp.dtype(x.dtype).itemsize

    budget_bytes = 2 * 1024 * 1024                       # ~2 MiB per x/out tile
    tile_seq = budget_bytes // max(1, d_model * dtype_bytes)
    tile_seq = max(8, min(1024, (tile_seq // 8) * 8))     # sublane multiple of 8
    seq_rounded = ((seq_len + 7) // 8) * 8
    tile_seq = min(tile_seq, seq_rounded)                 # don't over-tile short sequences

    grid = (pl.cdiv(seq_len, tile_seq), batch)            # batch last => fastest => PE block reused

    return pl.pallas_call(
        _add_pe_kernel,
        out_shape=jax.ShapeDtypeStruct((batch, seq_len, d_model), x.dtype),
        grid=grid,
        in_specs=[
            pl.BlockSpec((1, tile_seq, d_model), lambda s, b: (b, s, 0)),
            pl.BlockSpec((tile_seq, d_model), lambda s, b: (s, 0)),   # ignores batch -> no re-DMA
        ],
        out_specs=pl.BlockSpec((1, tile_seq, d_model), lambda s, b: (b, s, 0)),
        compiler_params=pltpu.CompilerParams(
            dimension_semantics=("parallel", "parallel"),
        ),
    )(x, pe)


def _pe_add_flat(x: jnp.ndarray, pe: jnp.ndarray) -> jnp.ndarray:
    """General / small d_model: flatten (seq, d_model) -> lane axis for dense, unmasked stores."""
    batch, seq_len, d_model = x.shape
    flat = seq_len * d_model
    dtype_bytes = jnp.dtype(x.dtype).itemsize

    x2 = x.reshape(batch, flat)                           # collapsing trailing dims: free reshape
    pe2 = pe.reshape(1, flat)

    lane_tile_max = 2048                                  # multiple of 128
    tile_flat = flat if flat <= lane_tile_max else lane_tile_max
    n_flat = pl.cdiv(flat, tile_flat)

    rows_budget = max(1, (2 * 1024 * 1024) // (tile_flat * dtype_bytes))
    if batch <= max(8, rows_budget):
        tile_b = batch                                     # full dim: always a legal block dim
    else:
        tile_b = max(8, (rows_budget // 8) * 8)            # sublane multiple of 8
    n_b = pl.cdiv(batch, tile_b)

    grid = (n_flat, n_b)                                   # batch last => fastest => PE block reused

    out = pl.pallas_call(
        _add_pe_kernel,
        out_shape=jax.ShapeDtypeStruct((batch, flat), x.dtype),
        grid=grid,
        in_specs=[
            pl.BlockSpec((tile_b, tile_flat), lambda f, b: (b, f)),
            pl.BlockSpec((1, tile_flat), lambda f, b: (0, f)),        # ignores batch -> no re-DMA
        ],
        out_specs=pl.BlockSpec((tile_b, tile_flat), lambda f, b: (b, f)),
        compiler_params=pltpu.CompilerParams(
            dimension_semantics=("parallel", "parallel"),
        ),
    )(x2, pe2)
    return out.reshape(batch, seq_len, d_model)


def positional_encoding(x: jnp.ndarray, pe_table: jnp.ndarray) -> jnp.ndarray:
    """x: (batch, seq_len, d_model). Returns x + pe[:seq_len] (broadcast over batch)."""
    batch, seq_len, d_model = x.shape
    assert seq_len <= pe_table.shape[0], "seq_len exceeds max_len of positional encoding table"
    pe = pe_table[:seq_len].astype(x.dtype)               # (seq_len, d_model)

    if d_model % 128 == 0:
        return _pe_add_3d(x, pe)
    return _pe_add_flat(x, pe)


class PositionalEncoding:
    """Mirror of the PyTorch module's forward semantics."""

    def __init__(self, d_model: int, max_len: int = 5000):
        self.d_model = d_model
        self.max_len = max_len
        self.pe = build_pe_table(max_len, d_model)         # float32 (max_len, d_model)

    def __call__(self, x: jnp.ndarray) -> jnp.ndarray:
        return positional_encoding(x, self.pe)

    # TODO(synk): some PyTorch variants attach nn.Dropout after the add; not part of this
    # forward spec, so it is not fused here (would be prng_random_bits + select in-kernel).


if __name__ == "__main__":
    key = jax.random.PRNGKey(0)

    # Small d_model (32) -> exercises the flattened lane-dense path.
    batch, seq_len, d_model = 2, 8, 32
    module = PositionalEncoding(d_model, max_len=64)
    x = jax.random.normal(key, (batch, seq_len, d_model), dtype=jnp.float32)
    out = jax.block_until_ready(module(x))
    expected = x + module.pe[:seq_len][None, :, :].astype(x.dtype)
    np.testing.assert_allclose(np.asarray(out), np.asarray(expected), rtol=1e-6, atol=1e-6)

    # d_model multiple of 128 -> exercises the 3D path (PE tile reused across batch).
    batch2, seq2, d2 = 2, 16, 128
    module2 = PositionalEncoding(d2, max_len=64)
    x2 = jax.random.normal(jax.random.PRNGKey(1), (batch2, seq2, d2), dtype=jnp.float32)
    out2 = jax.block_until_ready(module2(x2))
    expected2 = x2 + module2.pe[:seq2][None, :, :].astype(x2.dtype)
    np.testing.assert_allclose(np.asarray(out2), np.asarray(expected2), rtol=1e-6, atol=1e-6)

    print("KERNEL_OK")
</pallas_src>

<mosaic_0001>
module attributes {stable_mosaic.version = 11 : i64} {
  func.func @_add_pe_kernel(%arg0: i32, %arg1: i32, %arg2: memref<2x256xf32, #tpu.memory_space<vmem>>, %arg3: memref<1x256xf32, #tpu.memory_space<vmem>>, %arg4: memref<2x256xf32, #tpu.memory_space<vmem>>) attributes {dimension_semantics = [#tpu.dimension_semantics<parallel>, #tpu.dimension_semantics<parallel>], iteration_bounds = array<i64: 1, 1>, scalar_prefetch = 0 : i64, scratch_operands = 0 : i64, tpu.core_type = #tpu.core_type<tc>, window_params = [{transform_indices = @transform_0, window_bounds = array<i64: 2, 256>}, {transform_indices = @transform_1, window_bounds = array<i64: 1, 256>}, {transform_indices = @transform_2, window_bounds = array<i64: 2, 256>}]} {
    %c0 = arith.constant 0 : index
    %c0_0 = arith.constant 0 : index
    %0 = vector.load %arg2[%c0, %c0_0] : memref<2x256xf32, #tpu.memory_space<vmem>>, vector<2x256xf32>
    %c0_1 = arith.constant 0 : index
    %c0_2 = arith.constant 0 : index
    %1 = vector.load %arg3[%c0_1, %c0_2] : memref<1x256xf32, #tpu.memory_space<vmem>>, vector<1x256xf32>
    %2 = vector.broadcast %1 : vector<1x256xf32> to vector<2x256xf32>
    %3 = arith.addf %0, %2 : vector<2x256xf32>
    %c0_3 = arith.constant 0 : index
    %c0_4 = arith.constant 0 : index
    %4 = vector.load %arg4[%c0_3, %c0_4] : memref<2x256xf32, #tpu.memory_space<vmem>>, vector<2x256xf32>
    tpu.vector_store %arg4[%c0_3, %c0_4], %3 {strides = array<i32>} : memref<2x256xf32, #tpu.memory_space<vmem>>, vector<2x256xf32>,
    return
  }
  func.func @transform_0(%arg0: i32, %arg1: i32) -> (i32, i32) {
    %c0_i32 = arith.constant 0 : i32
    return %arg1, %arg0 : i32, i32
  }
  func.func @transform_1(%arg0: i32, %arg1: i32) -> (i32, i32) {
    %c0_i32 = arith.constant 0 : i32
    %c0_i32_0 = arith.constant 0 : i32
    return %c0_i32, %arg0 : i32, i32
  }
  func.func @transform_2(%arg0: i32, %arg1: i32) -> (i32, i32) {
    %c0_i32 = arith.constant 0 : i32
    return %arg1, %arg0 : i32, i32
  }
}

</mosaic_0001>

<bundles_post_ra>
// kernel: tpu_custom_call.1
= control target key start
LH: loop header
LB: loop body
LE: loop exit
PB: predicated region body
PF: predicated region fallthrough
CT: control target
= control target key end

     0   :  { %7 = vsyncpa [#allocation3], 0  ;;  %s157_s0 = inlined_call_operand.hbm [shape: f32[2,256], index: 0, kind: input, shape index: {}]   ;;  %s158_s1 = inlined_call_operand.vmem [shape: f32[1,256], index: 1, kind: input, shape index: {}]   ;;  %s159_s2 = inlined_call_operand.hbm [shape: f32[2,256], index: 2, kind: output, shape index: {}]  }
   0x1   :  { %8 = vsyncpa [#allocation4], 0  ;;  %s112_s9 = smov [#allocation2]   ;;  %s64_s13 = scalar_lea.hbm %s157_s0, 64 }
   0x2   :  { %s15_s10 = sshll.u32 %s112_s9, 4  ;;  %p65_p0 = scmp.ne.s32.totalorder %s157_s0, %s64_s13  ;;  %s16_s10 = int_to_ptr.vmem [resolvable:$true] %s15_s10 }
   0x3   :  { %p68_p1 = scmp.lt.u32.totalorder %s64_s13, %s157_s0 }
   0x5   :  { %p70_p2 = pnand %p68_p1, %p65_p0 }
   0x7   :  { %73 = shalt.err (!%p70_p2)
}
   0x8   :  { %s74_s18 = scalar_lea.vmem %s16_s10, 64  ;;  %p79_p4 = scmp.lt.s32.totalorder %s16_s10, %s16_s10 }
   0x9   :  { %p75_p3 = scmp.ne.s32.totalorder %s16_s10, %s74_s18  ;;  %p80_p5 = scmp.lt.s32.totalorder %s74_s18, %s74_s18 }
   0xb   :  { %p81_p6 = por %p80_p5, %p79_p4 }
   0xd   :  { %p82_p7 = pnand %p81_p6, %p75_p3 }
   0xf   :  { %85 = shalt.err (!%p82_p7)
}
  0x10   :  { %18 = dma.hbm_to_vmem [thread:$0]  %s157_s0, 64, %s16_s10, [#allocation3]  }
  0x11   :  { %108 = dma.done.wait [#allocation3], 64  }
  0x12   :  { %109 = vsyncadd [#allocation3], 4294967232  ;;  %v27_v0 = vlaneseq  ;;  %v113_v1 = vmov 1983009808   ;;  %v25_v7 = vld [vmem:[%s158_s1] sm:$0x3] }
  0x13   :  { %v37_v2 = vunpack.c.l.s4 %v113_v1  ;;  %v24_v12 = vld [vmem:[#allocation2] sm:$0xf]  ;;  %s114_s23 = smov [#allocation5]  }
  0x14   :  { %v28_v3 = vshrl.u32 %v27_v0, 7  ;;  %s52_s0 = sshll.u32 %s114_s23, 4  ;;  %s53_s0 = int_to_ptr.vmem [resolvable:$true] %s52_s0 }
  0x15   :  { %v38_v6 = vunpack.c.0.s8 %v37_v2  ;;  %s86_s24 = scalar_lea.vmem %s53_s0, 64  ;;  %p91_p9 = scmp.lt.s32.totalorder %s53_s0, %s53_s0 }
  0x16   :  { %v29_v4 = vsub.s32 0, %v28_v3  ;;  %v33_v5 = vsub.s32 1, %v28_v3  ;;  %p87_p8 = scmp.ne.s32.totalorder %s53_s0, %s86_s24  ;;  %p92_p10 = scmp.lt.s32.totalorder %s86_s24, %s86_s24 }
  0x17   :  { %v41_v10 = vsub.s32 %v38_v6, %v28_v3 }
  0x18   :  { %v30_v8 = vrot.slane %v25_v7, %v29_v4  ;;  %v34_v9 = vrot.slane %v25_v7, %v33_v5  ;;  %p93_p11 = por %p92_p10, %p91_p9 }
  0x1a   :  { %v35_v11 = vcombine.low %v30_v8, %v34_v9  ;;  %p94_p12 = pnand %p93_p11, %p87_p8 }
  0x1c   :  { %v42_v13 = vrot.slane %v35_v11, %v41_v10 }
  0x1e   :  { %v44_v14 = vadd.f32 %v42_v13, %v24_v12 }
  0x20   :  { %45 = vst [vmem:[#allocation5] sm:$0xf] %v44_v14 }
  0x21   :  { %97 = shalt.err (!%p94_p12)
}
  0x22   :  { %s98_s26 = scalar_lea.hbm %s159_s2, 64 }
  0x23   :  { %p99_p13 = scmp.ne.s32.totalorder %s159_s2, %s98_s26  ;;  %p102_p0 = scmp.lt.u32.totalorder %s98_s26, %s159_s2 }
  0x25   :  { %p104_p1 = pnand %p102_p0, %p99_p13 }
  0x27   :  { %107 = shalt.err (!%p104_p1)
}
  0x28   :  { %55 = dma.vmem_to_hbm [thread:$0]  %s53_s0, 64, %s159_s2, [#allocation4]  }
  0x29   :  { %110 = dma.done.wait [#allocation4], 64  }
  0x2a   :  { %111 = vsyncadd [#allocation4], 4294967232 }
  0x2b   :  { %59 = vsyncpa [#allocation3], 1 }
  0x2c   :  { %60 = vsyncpa [#allocation4], 1 }

</bundles_post_ra>
